<compile_context>
chip_gen: v6e
topology: v6e:2x2x1
jax: 0.10.0
libtpu: 0.0.40
codegen_flags: <defaults>
</compile_context>

<pallas_src>
import functools

import jax
import jax.numpy as jnp
from jax.experimental import pallas as pl
from jax.experimental.pallas import tpu as pltpu


def _fused_kernel(x_ref, w1t_ref, b1_ref, w2t_ref, b2_ref,
                  w3_ref, b3_ref, w4_ref, b4_ref,
                  out_ref, gfeat_scr, *, bb, n_pts):
    """One grid step = bb batch elements; last step also runs the cls head."""
    i = pl.program_id(0)
    last = pl.num_programs(0) - 1

    x = x_ref[...]                                   # [Cin, bb*n_pts] f32
    w1t = w1t_ref[...]                               # [H1, Cin] f32
    cin = x.shape[0]

    # ---- layer 1: Conv1d(k=1), Cin tiny -> outer-product FMAs on the VPU ----
    acc = w1t[:, 0:1] * x[0:1, :]                    # [H1, bb*n_pts]
    for c in range(1, cin):                          # static unroll (Cin=3)
        acc = acc + w1t[:, c:c + 1] * x[c:c + 1, :]
    h1 = jnp.maximum(acc + b1_ref[...], 0.0)         # [H1, bb*n_pts] f32

    # ---- layer 2: one MXU matmul, streaming dim = bb*n_pts (>= 256) ----
    h2 = jnp.dot(w2t_ref[...], h1.astype(w2t_ref.dtype),
                 preferred_element_type=jnp.float32)  # [H2, bb*n_pts]
    h2 = jnp.maximum(h2 + b2_ref[...], 0.0)           # f32 elementwise

    # ---- per-batch-element global max pool over the point (lane) axis ----
    # 128-aligned lane slices; one sublane->lane relayout per batch element,
    # then a single slab store into the resident gfeat scratch.
    rows = []
    for b in range(bb):                               # static unroll, bb <= 8
        seg = h2[:, b * n_pts:(b + 1) * n_pts]        # [H2, n_pts]
        rows.append(jnp.max(seg, axis=1)[None, :])    # [1, H2]
    g_blk = rows[0] if bb == 1 else jnp.concatenate(rows, axis=0)  # [bb, H2]
    row0 = pl.multiple_of(i * bb, bb)
    gfeat_scr[pl.ds(row0, bb), :] = g_blk

    # ---- head epilogue: runs once, after the last batch block ----
    @pl.when(i == last)
    def _():
        g = gfeat_scr[...]                            # [B_pad, H2] f32
        h3 = jnp.dot(g.astype(w3_ref.dtype), w3_ref[...],
                     preferred_element_type=jnp.float32) + b3_ref[...]
        h3 = jnp.maximum(h3, 0.0)                     # [B_pad, H3] f32
        logits = jnp.dot(h3.astype(w4_ref.dtype), w4_ref[...],
                         preferred_element_type=jnp.float32) + b4_ref[...]
        out_ref[...] = logits.astype(out_ref.dtype)   # [B_pad, NCLS_pad]


def basecls_ase_forward(x_ncw, params, *, use_bf16=False):
    """x_ncw: [B, Cin, N] (PyTorch NCW layout). Returns logits [B, NCLS]."""
    w1t, b1, w2t, b2, w3, b3, w4, b4 = params
    B, Cin, N = x_ncw.shape
    H1, H2 = w1t.shape[0], w2t.shape[0]
    H3, NCLS = w3.shape[1], w4.shape[1]

    LANE, SUB = 128, 8
    # Batch blocking: whole batch in one step if B <= 8, else 8-row blocks.
    if B <= SUB:
        bb, b_pad = B, B
    else:
        bb = SUB
        b_pad = ((B + SUB - 1) // SUB) * SUB

    # bf16 MXU operands OK on v5e/v6e/v7x; elementwise / biases / max stay f32.
    mxu_dtype = jnp.bfloat16 if use_bf16 else jnp.float32
    w2t_k = w2t.astype(mxu_dtype)
    w3_k = w3.astype(mxu_dtype)

    # Lane-dense logits slab: pad NCLS up to a multiple of 128 lanes.
    ncls_pad = ((NCLS + LANE - 1) // LANE) * LANE
    w4_k = jnp.pad(w4, ((0, 0), (0, ncls_pad - NCLS))).astype(mxu_dtype)
    b4_k = jnp.pad(b4, ((0, 0), (0, ncls_pad - NCLS)))

    # Layout plumbing (tiny, Cin=3, fuses in XLA): flatten all points onto one
    # lane-dense stream axis so the kernel needs no in-kernel relayout of x.
    x_flat = jnp.transpose(x_ncw, (1, 0, 2)).reshape(Cin, B * N)
    if b_pad != B:
        x_flat = jnp.pad(x_flat, ((0, 0), (0, (b_pad - B) * N)))

    nb = b_pad // bb
    kernel = functools.partial(_fused_kernel, bb=bb, n_pts=N)

    logits_pad = pl.pallas_call(
        kernel,
        out_shape=jax.ShapeDtypeStruct((b_pad, ncls_pad), jnp.float32),
        grid_spec=pltpu.PrefetchScalarGridSpec(
            num_scalar_prefetch=0,
            grid=(nb,),
            in_specs=[
                pl.BlockSpec((Cin, bb * N), lambda i: (0, i)),   # point stream
                pl.BlockSpec((H1, Cin), lambda i: (0, 0)),       # resident weights
                pl.BlockSpec((H1, 1), lambda i: (0, 0)),
                pl.BlockSpec((H2, H1), lambda i: (0, 0)),
                pl.BlockSpec((H2, 1), lambda i: (0, 0)),
                pl.BlockSpec((H2, H3), lambda i: (0, 0)),
                pl.BlockSpec((1, H3), lambda i: (0, 0)),
                pl.BlockSpec((H3, ncls_pad), lambda i: (0, 0)),
                pl.BlockSpec((1, ncls_pad), lambda i: (0, 0)),
            ],
            out_specs=pl.BlockSpec((b_pad, ncls_pad), lambda i: (0, 0)),
            scratch_shapes=[pltpu.VMEM((b_pad, H2), jnp.float32)],
        ),
        compiler_params=pltpu.CompilerParams(
            # carried gfeat scratch + fused head epilogue -> serial batch axis
            dimension_semantics=("arbitrary",)),
    )(x_flat, w1t, b1, w2t_k, b2, w3_k, b3, w4_k, b4_k)

    out = logits_pad[:B] if b_pad != B else logits_pad
    return out[:, :NCLS] if ncls_pad != NCLS else out


def _init_params(key, cin, h1, h2, h3, ncls):
    """Encoder weights channels-first (kernel layout); head weights [fan_in, fan_out]."""
    ks = jax.random.split(key, 8)

    def u(k, shape, fan_in):
        s = 1.0 / jnp.sqrt(jnp.float32(fan_in))
        return jax.random.uniform(k, shape, jnp.float32, -s, s)

    w1t = u(ks[0], (h1, cin), cin)
    b1 = jax.random.normal(ks[1], (h1, 1), jnp.float32) * 0.01
    w2t = u(ks[2], (h2, h1), h1)
    b2 = jax.random.normal(ks[3], (h2, 1), jnp.float32) * 0.01
    w3 = u(ks[4], (h2, h3), h2)
    b3 = jax.random.normal(ks[5], (1, h3), jnp.float32) * 0.01
    w4 = u(ks[6], (h3, ncls), h3)
    b4 = jax.random.normal(ks[7], (1, ncls), jnp.float32) * 0.01
    return (w1t, b1, w2t, b2, w3, b3, w4, b4)


def _reference(x_ncw, params):
    w1t, b1, w2t, b2, w3, b3, w4, b4 = params
    hp = jax.lax.Precision.HIGHEST
    h1 = jnp.maximum(jnp.einsum('hc,bcn->bhn', w1t, x_ncw, precision=hp) + b1[None], 0.0)
    h2 = jnp.maximum(jnp.einsum('kh,bhn->bkn', w2t, h1, precision=hp) + b2[None], 0.0)
    gf = jnp.max(h2, axis=2)                             # [B, H2]
    h3 = jnp.maximum(jnp.dot(gf, w3, precision=hp) + b3, 0.0)
    return jnp.dot(h3, w4, precision=hp) + b4


if __name__ == "__main__":
    key = jax.random.PRNGKey(0)
    k_x, k_p = jax.random.split(key)

    B, Cin, N = 2, 3, 128                 # point cloud: batch=2, xyz, 128 points
    H1, H2, H3, NCLS = 64, 128, 64, 16

    x = jax.random.normal(k_x, (B, Cin, N), jnp.float32)   # PyTorch NCW layout
    params = _init_params(k_p, Cin, H1, H2, H3, NCLS)

    fwd = jax.jit(basecls_ase_forward, static_argnames=("use_bf16",))

    # f32 path (reference-accurate)
    logits = jax.block_until_ready(fwd(x, params))
    ref = _reference(x, params)
    assert logits.shape == (B, NCLS)
    assert jnp.allclose(logits, ref, atol=1e-3, rtol=1e-3)

    # bf16 MXU-operand path (throughput option on all generations); looser tol.
    logits_bf16 = jax.block_until_ready(fwd(x, params, use_bf16=True))
    assert logits_bf16.shape == (B, NCLS)
    assert jnp.allclose(logits_bf16, ref, atol=5e-2, rtol=5e-2)

    print("KERNEL_OK")
</pallas_src>

<mosaic_0001>
module attributes {stable_mosaic.version = 11 : i64} {
  func.func @_fused_kernel(%arg0: i32, %arg1: memref<3x256xf32, #tpu.memory_space<vmem>>, %arg2: memref<64x3xf32, #tpu.memory_space<vmem>>, %arg3: memref<64x1xf32, #tpu.memory_space<vmem>>, %arg4: memref<128x64xf32, #tpu.memory_space<vmem>>, %arg5: memref<128x1xf32, #tpu.memory_space<vmem>>, %arg6: memref<128x64xf32, #tpu.memory_space<vmem>>, %arg7: memref<1x64xf32, #tpu.memory_space<vmem>>, %arg8: memref<64x128xf32, #tpu.memory_space<vmem>>, %arg9: memref<1x128xf32, #tpu.memory_space<vmem>>, %arg10: memref<2x128xf32, #tpu.memory_space<vmem>>, %arg11: memref<2x128xf32, #tpu.memory_space<vmem>>) attributes {dimension_semantics = [#tpu.dimension_semantics<arbitrary>], iteration_bounds = array<i64: 1>, scalar_prefetch = 0 : i64, scratch_operands = 1 : i64, tpu.core_type = #tpu.core_type<tc>, window_params = [{transform_indices = @transform_0, window_bounds = array<i64: 3, 256>}, {pipeline_mode = #tpu.pipeline_mode<synchronous>, transform_indices = @transform_1, window_bounds = array<i64: 64, 3>}, {pipeline_mode = #tpu.pipeline_mode<synchronous>, transform_indices = @transform_2, window_bounds = array<i64: 64, 1>}, {pipeline_mode = #tpu.pipeline_mode<synchronous>, transform_indices = @transform_3, window_bounds = array<i64: 128, 64>}, {pipeline_mode = #tpu.pipeline_mode<synchronous>, transform_indices = @transform_4, window_bounds = array<i64: 128, 1>}, {pipeline_mode = #tpu.pipeline_mode<synchronous>, transform_indices = @transform_5, window_bounds = array<i64: 128, 64>}, {pipeline_mode = #tpu.pipeline_mode<synchronous>, transform_indices = @transform_6, window_bounds = array<i64: 1, 64>}, {pipeline_mode = #tpu.pipeline_mode<synchronous>, transform_indices = @transform_7, window_bounds = array<i64: 64, 128>}, {pipeline_mode = #tpu.pipeline_mode<synchronous>, transform_indices = @transform_8, window_bounds = array<i64: 1, 128>}, {pipeline_mode = #tpu.pipeline_mode<synchronous>, transform_indices = @transform_9, window_bounds = array<i64: 2, 128>}]} {
    %c0 = arith.constant 0 : index
    %c0_0 = arith.constant 0 : index
    %0 = vector.load %arg1[%c0, %c0_0] : memref<3x256xf32, #tpu.memory_space<vmem>>, vector<3x256xf32>
    %c0_1 = arith.constant 0 : index
    %c0_2 = arith.constant 0 : index
    %1 = vector.load %arg2[%c0_1, %c0_2] : memref<64x3xf32, #tpu.memory_space<vmem>>, vector<64x3xf32>
    %2 = vector.extract_strided_slice %1 {offsets = [0, 0], sizes = [64, 1], strides = [1, 1]} : vector<64x3xf32> to vector<64x1xf32>
    %3 = vector.extract_strided_slice %0 {offsets = [0, 0], sizes = [1, 256], strides = [1, 1]} : vector<3x256xf32> to vector<1x256xf32>
    %4 = vector.broadcast %2 : vector<64x1xf32> to vector<64x256xf32>
    %5 = vector.broadcast %3 : vector<1x256xf32> to vector<64x256xf32>
    %6 = arith.mulf %4, %5 : vector<64x256xf32>
    %7 = vector.extract_strided_slice %1 {offsets = [0, 1], sizes = [64, 1], strides = [1, 1]} : vector<64x3xf32> to vector<64x1xf32>
    %8 = vector.extract_strided_slice %0 {offsets = [1, 0], sizes = [1, 256], strides = [1, 1]} : vector<3x256xf32> to vector<1x256xf32>
    %9 = vector.broadcast %7 : vector<64x1xf32> to vector<64x256xf32>
    %10 = vector.broadcast %8 : vector<1x256xf32> to vector<64x256xf32>
    %11 = arith.mulf %9, %10 : vector<64x256xf32>
    %12 = arith.addf %6, %11 : vector<64x256xf32>
    %13 = vector.extract_strided_slice %1 {offsets = [0, 2], sizes = [64, 1], strides = [1, 1]} : vector<64x3xf32> to vector<64x1xf32>
    %14 = vector.extract_strided_slice %0 {offsets = [2, 0], sizes = [1, 256], strides = [1, 1]} : vector<3x256xf32> to vector<1x256xf32>
    %15 = vector.broadcast %13 : vector<64x1xf32> to vector<64x256xf32>
    %16 = vector.broadcast %14 : vector<1x256xf32> to vector<64x256xf32>
    %17 = arith.mulf %15, %16 : vector<64x256xf32>
    %18 = arith.addf %12, %17 : vector<64x256xf32>
    %c0_3 = arith.constant 0 : index
    %c0_4 = arith.constant 0 : index
    %19 = vector.load %arg3[%c0_3, %c0_4] : memref<64x1xf32, #tpu.memory_space<vmem>>, vector<64x1xf32>
    %20 = vector.broadcast %19 : vector<64x1xf32> to vector<64x256xf32>
    %21 = arith.addf %18, %20 : vector<64x256xf32>
    %cst = arith.constant 0.000000e+00 : f32
    %22 = vector.broadcast %cst : f32 to vector<64x256xf32>
    %23 = arith.maximumf %21, %22 : vector<64x256xf32>
    %c0_5 = arith.constant 0 : index
    %c0_6 = arith.constant 0 : index
    %24 = vector.load %arg4[%c0_5, %c0_6] : memref<128x64xf32, #tpu.memory_space<vmem>>, vector<128x64xf32>
    %cst_7 = arith.constant dense<0.000000e+00> : vector<128x256xf32>
    %25 = tpu.matmul %24, %23, %cst_7 {dimension_numbers = #tpu.dot_dimension_numbers<[1], [0], [0], [1], [0, 0, 1, 1], [], []>} : vector<128x64xf32>, vector<64x256xf32>, vector<128x256xf32> -> vector<128x256xf32>
    %c0_8 = arith.constant 0 : index
    %c0_9 = arith.constant 0 : index
    %26 = vector.load %arg5[%c0_8, %c0_9] : memref<128x1xf32, #tpu.memory_space<vmem>>, vector<128x1xf32>
    %27 = vector.broadcast %26 : vector<128x1xf32> to vector<128x256xf32>
    %28 = arith.addf %25, %27 : vector<128x256xf32>
    %cst_10 = arith.constant 0.000000e+00 : f32
    %29 = vector.broadcast %cst_10 : f32 to vector<128x256xf32>
    %30 = arith.maximumf %28, %29 : vector<128x256xf32>
    %31 = vector.extract_strided_slice %30 {offsets = [0, 0], sizes = [128, 128], strides = [1, 1]} : vector<128x256xf32> to vector<128x128xf32>
    %cst_11 = arith.constant dense<0xFF800000> : vector<128xf32>
    %32 = vector.multi_reduction <maximumf>, %31, %cst_11 [1] : vector<128x128xf32> to vector<128xf32>
    %33 = vector.shape_cast %32 : vector<128xf32> to vector<1x128xf32>
    %34 = vector.extract_strided_slice %30 {offsets = [0, 128], sizes = [128, 128], strides = [1, 1]} : vector<128x256xf32> to vector<128x128xf32>
    %cst_12 = arith.constant dense<0xFF800000> : vector<128xf32>
    %35 = vector.multi_reduction <maximumf>, %34, %cst_12 [1] : vector<128x128xf32> to vector<128xf32>
    %36 = vector.shape_cast %35 : vector<128xf32> to vector<1x128xf32>
    %37 = tpu.concatenate %33, %36 in 0 : vector<1x128xf32>, vector<1x128xf32> -> vector<2x128xf32>
    %c2_i32 = arith.constant 2 : i32
    %38 = arith.muli %arg0, %c2_i32 : i32
    %39 = tpu.assume_multiple %38, 2 : i32
    %40 = arith.index_cast %39 : i32 to index
    %c0_13 = arith.constant 0 : index
    %41 = vector.load %arg11[%40, %c0_13] : memref<2x128xf32, #tpu.memory_space<vmem>>, vector<2x128xf32>
    tpu.vector_store %arg11[%40, %c0_13], %37 {strides = array<i32>} : memref<2x128xf32, #tpu.memory_space<vmem>>, vector<2x128xf32>,
    %c0_i32 = arith.constant 0 : i32
    %42 = arith.cmpi eq, %arg0, %c0_i32 : i32
    %43 = arith.extui %42 : i1 to i32
    %c0_i32_14 = arith.constant 0 : i32
    %44 = arith.cmpi ne, %43, %c0_i32_14 : i32
    scf.if %44 {
      %c0_15 = arith.constant 0 : index
      %c0_16 = arith.constant 0 : index
      %45 = vector.load %arg11[%c0_15, %c0_16] : memref<2x128xf32, #tpu.memory_space<vmem>>, vector<2x128xf32>
      %c0_17 = arith.constant 0 : index
      %c0_18 = arith.constant 0 : index
      %46 = vector.load %arg6[%c0_17, %c0_18] : memref<128x64xf32, #tpu.memory_space<vmem>>, vector<128x64xf32>
      %cst_19 = arith.constant dense<0.000000e+00> : vector<2x64xf32>
      %47 = tpu.matmul %45, %46, %cst_19 {dimension_numbers = #tpu.dot_dimension_numbers<[1], [0], [0], [1], [0, 0, 1, 1], [], []>} : vector<2x128xf32>, vector<128x64xf32>, vector<2x64xf32> -> vector<2x64xf32>
      %c0_20 = arith.constant 0 : index
      %c0_21 = arith.constant 0 : index
      %48 = vector.load %arg7[%c0_20, %c0_21] : memref<1x64xf32, #tpu.memory_space<vmem>>, vector<1x64xf32>
      %49 = vector.broadcast %48 : vector<1x64xf32> to vector<2x64xf32>
      %50 = arith.addf %47, %49 : vector<2x64xf32>
      %cst_22 = arith.constant 0.000000e+00 : f32
      %51 = vector.broadcast %cst_22 : f32 to vector<2x64xf32>
      %52 = arith.maximumf %50, %51 : vector<2x64xf32>
      %c0_23 = arith.constant 0 : index
      %c0_24 = arith.constant 0 : index
      %53 = vector.load %arg8[%c0_23, %c0_24] : memref<64x128xf32, #tpu.memory_space<vmem>>, vector<64x128xf32>
      %cst_25 = arith.constant dense<0.000000e+00> : vector<2x128xf32>
      %54 = tpu.matmul %52, %53, %cst_25 {dimension_numbers = #tpu.dot_dimension_numbers<[1], [0], [0], [1], [0, 0, 1, 1], [], []>} : vector<2x64xf32>, vector<64x128xf32>, vector<2x128xf32> -> vector<2x128xf32>
      %c0_26 = arith.constant 0 : index
      %c0_27 = arith.constant 0 : index
      %55 = vector.load %arg9[%c0_26, %c0_27] : memref<1x128xf32, #tpu.memory_space<vmem>>, vector<1x128xf32>
      %56 = vector.broadcast %55 : vector<1x128xf32> to vector<2x128xf32>
      %57 = arith.addf %54, %56 : vector<2x128xf32>
      %c0_28 = arith.constant 0 : index
      %c0_29 = arith.constant 0 : index
      %58 = vector.load %arg10[%c0_28, %c0_29] : memref<2x128xf32, #tpu.memory_space<vmem>>, vector<2x128xf32>
      tpu.vector_store %arg10[%c0_28, %c0_29], %57 {strides = array<i32>} : memref<2x128xf32, #tpu.memory_space<vmem>>, vector<2x128xf32>,
    } else {
    }
    return
  }
  func.func @transform_0(%arg0: i32) -> (i32, i32) {
    %c0_i32 = arith.constant 0 : i32
    %c0_i32_0 = arith.constant 0 : i32
    return %c0_i32, %arg0 : i32, i32
  }
  func.func @transform_1(%arg0: i32) -> (i32, i32) {
    %c0_i32 = arith.constant 0 : i32
    %c0_i32_0 = arith.constant 0 : i32
    %c0_i32_1 = arith.constant 0 : i32
    return %c0_i32, %c0_i32_0 : i32, i32
  }
  func.func @transform_2(%arg0: i32) -> (i32, i32) {
    %c0_i32 = arith.constant 0 : i32
    %c0_i32_0 = arith.constant 0 : i32
    %c0_i32_1 = arith.constant 0 : i32
    return %c0_i32, %c0_i32_0 : i32, i32
  }
  func.func @transform_3(%arg0: i32) -> (i32, i32) {
    %c0_i32 = arith.constant 0 : i32
    %c0_i32_0 = arith.constant 0 : i32
    %c0_i32_1 = arith.constant 0 : i32
    return %c0_i32, %c0_i32_0 : i32, i32
  }
  func.func @transform_4(%arg0: i32) -> (i32, i32) {
    %c0_i32 = arith.constant 0 : i32
    %c0_i32_0 = arith.constant 0 : i32
    %c0_i32_1 = arith.constant 0 : i32
    return %c0_i32, %c0_i32_0 : i32, i32
  }
  func.func @transform_5(%arg0: i32) -> (i32, i32) {
    %c0_i32 = arith.constant 0 : i32
    %c0_i32_0 = arith.constant 0 : i32
    %c0_i32_1 = arith.constant 0 : i32
    return %c0_i32, %c0_i32_0 : i32, i32
  }
  func.func @transform_6(%arg0: i32) -> (i32, i32) {
    %c0_i32 = arith.constant 0 : i32
    %c0_i32_0 = arith.constant 0 : i32
    %c0_i32_1 = arith.constant 0 : i32
    return %c0_i32, %c0_i32_0 : i32, i32
  }
  func.func @transform_7(%arg0: i32) -> (i32, i32) {
    %c0_i32 = arith.constant 0 : i32
    %c0_i32_0 = arith.constant 0 : i32
    %c0_i32_1 = arith.constant 0 : i32
    return %c0_i32, %c0_i32_0 : i32, i32
  }
  func.func @transform_8(%arg0: i32) -> (i32, i32) {
    %c0_i32 = arith.constant 0 : i32
    %c0_i32_0 = arith.constant 0 : i32
    %c0_i32_1 = arith.constant 0 : i32
    return %c0_i32, %c0_i32_0 : i32, i32
  }
  func.func @transform_9(%arg0: i32) -> (i32, i32) {
    %c0_i32 = arith.constant 0 : i32
    %c0_i32_0 = arith.constant 0 : i32
    %c0_i32_1 = arith.constant 0 : i32
    return %c0_i32, %c0_i32_0 : i32, i32
  }
}

</mosaic_0001>

<bundles_post_ra>
// kernel: basecls_ase_forward.1
= control target key start
LH: loop header
LB: loop body
LE: loop exit
PB: predicated region body
PF: predicated region fallthrough
CT: control target
= control target key end

     0   :  { %v1357_v2 = vmov 2   ;;  %v1358_v3 = vmov 0   ;;  %v1359_v5 = vmov 1   ;;  %s1950_s0 = inlined_call_operand.vmem [shape: f32[3,256], index: 0, kind: input, shape index: {}]   ;;  %s1951_s1 = inlined_call_operand.vmem [shape: f32[64,3], index: 1, kind: input, shape index: {}]   ;;  %s1952_s2 = inlined_call_operand.vmem [shape: f32[64,1], index: 2, kind: input, shape index: {}]   ;;  %s1953_s3 = inlined_call_operand.vmem [shape: f32[128,64], index: 3, kind: input, shape index: {}]   ;;  %s1954_s4 = inlined_call_operand.vmem [shape: f32[128,1], index: 4, kind: input, shape index: {}]   ;;  %s1955_s5 = inlined_call_operand.vmem [shape: f32[128,64], index: 5, kind: input, shape index: {}]   ;;  %s1956_s6 = inlined_call_operand.vmem [shape: f32[1,64], index: 6, kind: input, shape index: {}]   ;;  %s1957_s7 = inlined_call_operand.vmem [shape: f32[64,128], index: 7, kind: input, shape index: {}]   ;;  %s1958_s8 = inlined_call_operand.vmem [shape: f32[1,128], index: 8, kind: input, shape index: {}]   ;;  %s1959_s9 = inlined_call_operand.hbm [shape: f32[2,128], index: 9, kind: output, shape index: {}]  }
   0x1   :  { %v40_v0 = vld [vmem:[%s1951_s1 + $0x30] sm:$0xff]  ;;  %v39_v1 = vld [vmem:[%s1951_s1 + $0x28] sm:$0xff]  ;;  %1321 = vset.pattern.permute.xlu0 %v1357_v2  ;;  %1315 = vset.pattern.permute.xlu1 %v1358_v3  ;;  %v41_v4 = vld [vmem:[%s1951_s1 + $0x38] sm:$0xff] }
   0x2   :  { %74 = vperm.xlu1 %1315, %v40_v0   ;;  %220 = vperm.xlu0 %1321, %v39_v1   ;;  %v37_v6 = vld [vmem:[%s1951_s1 + $0x18] sm:$0xff] }
   0x6   :  { %1316 = vset.pattern.permute.xlu1 %v1359_v5  ;;  %1322 = vset.pattern.permute.xlu0 %v1359_v5 }
   0x7   :  { %142 = vperm.xlu1 %1316, %v40_v0   ;;  %146 = vperm.xlu0 %1322, %v41_v4  }
   0xb   :  { %1317 = vset.pattern.permute.xlu1 %v1357_v2  ;;  %130 = vperm.xlu0 %1322, %v37_v6  }
   0xc   :  { %14 = vsyncpa [#allocation4], 0  ;;  %228 = vperm.xlu1 %1317, %v41_v4   ;;  %v35_v7 = vld [vmem:[%s1951_s1 + $0x8] sm:$0xff]  ;;  %v38_v8 = vld [vmem:[%s1951_s1 + $0x20] sm:$0xff]  ;;  %v1360_v28 = vmov 0.0   ;;  %v83_v38 = vlaneseq  ;;  %vm473_vm0 = vcmask 523264  }
   0xd   :  { %v288_v9 = vld [vmem:[%s1952_s2 + $0x38] sm:$0xff]  ;;  %v36_v10 = vld [vmem:[%s1951_s1 + $0x10] sm:$0xff]  ;;  %v286_v11 = vld [vmem:[%s1952_s2 + $0x28] sm:$0xff]  ;;  %586 = vmatprep.mubr.f32.mxu0 %v1360_v28  ;;  %1255 = vmatprep.subr.mxu1 %v1360_v28  ;;  %vm1361_vm1 = vmmov 0   ;;  %vm806_vm2 = vcmask 130112   ;;  %vm813_vm3 = vcmask 195712  }
   0xe   :  { %v34_v12 = vld [vmem:[%s1951_s1] sm:$0xff]  ;;  %v284_v13 = vld [vmem:[%s1952_s2 + $0x18] sm:$0xff]  ;;  %v287_v14 = vld [vmem:[%s1952_s2 + $0x30] sm:$0xff]  ;;  %v1534_v41 = vshrl.u32 %v83_v38, 7  ;;  %1287 = vmatprep.mubr.msk.f32.mxu1 %vm1361_vm1, %v1360_v28  ;;  %vm820_vm4 = vcmask 261312   ;;  %vm827_vm5 = vcmask 326912  }
   0xf   :  { %122 = vperm.xlu0 %1322, %v35_v7   ;;  %v283_v15 = vld [vmem:[%s1952_s2 + $0x10] sm:$0xff]  ;;  %v281_v16 = vld [vmem:[%s1952_s2] sm:$0xff]  ;;  %v378_v17 = vld [vmem:[%s1954_s4 + $0x8] sm:$0xff]  ;;  %vm834_vm6 = vcmask 392512   ;;  %vm841_vm7 = vcmask 458112   ;;  %vm848_vm8 = vcmask 523712  }
  0x10   :  { %1318 = vset.pattern.permute.xlu1 %v1359_v5  ;;  %v380_v18 = vld [vmem:[%s1954_s4 + $0x18] sm:$0xff]  ;;  %v382_v19 = vld [vmem:[%s1954_s4 + $0x28] sm:$0xff]  ;;  %v285_v21 = vld [vmem:[%s1952_s2 + $0x20] sm:$0xff]  ;;  %v85_v44 = vsub.s32 0, %v1534_v41  ;;  %v89_v45 = vsub.s32 4, %v1534_v41  ;;  %v151_v46 = vsub.s32 1, %v1534_v41 }
  0x11   :  { %138 = vperm.xlu1 %1318, %v39_v1   ;;  %v384_v20 = vld [vmem:[%s1954_s4 + $0x38] sm:$0xff]  ;;  %v386_v22 = vld [vmem:[%s1954_s4 + $0x48] sm:$0xff]  ;;  %v377_v27 = vld [vmem:[%s1954_s4] sm:$0xff]  ;;  %v155_v47 = vsub.s32 5, %v1534_v41  ;;  %v233_v50 = vsub.s32 2, %v1534_v41  ;;  %v237_v51 = vsub.s32 6, %v1534_v41 }
  0x12   :  { %v388_v23 = vld [vmem:[%s1954_s4 + $0x58] sm:$0xff]  ;;  %v390_v24 = vld [vmem:[%s1954_s4 + $0x68] sm:$0xff]  ;;  %v379_v29 = vld [vmem:[%s1954_s4 + $0x10] sm:$0xff]  ;;  %vm855_vm9 = vcmask 589312   ;;  %vm862_vm10 = vcmask 654912   ;;  %vm869_vm11 = vcmask 720512  }
  0x13   :  { %1329 = vset.pattern.permute.xlu0 %v1358_v3  ;;  %v392_v25 = vld [vmem:[%s1954_s4 + $0x78] sm:$0xff]  ;;  %v282_v26 = vld [vmem:[%s1952_s2 + $0x8] sm:$0xff]  ;;  %v381_v30 = vld [vmem:[%s1954_s4 + $0x20] sm:$0xff]  ;;  %vm876_vm12 = vcmask 786112   ;;  %vm883_vm13 = vcmask 851712   ;;  %vm890_vm14 = vcmask 917312  }
  0x14   :  { %79 = vperm.xlu0 %1329, %v41_v4   ;;  %v383_v31 = vld [vmem:[%s1954_s4 + $0x30] sm:$0xff]  ;;  %v385_v32 = vld [vmem:[%s1954_s4 + $0x40] sm:$0xff]  ;;  %vm897_vm15 = vcmask 982912   ;;  %s1362_s13 = smov [#allocation3]  }
  0x15   :  { %1319 = vset.pattern.permute.xlu1 %v1357_v2  ;;  %v387_v33 = vld [vmem:[%s1954_s4 + $0x50] sm:$0xff]  ;;  %v389_v34 = vld [vmem:[%s1954_s4 + $0x60] sm:$0xff] }
  0x16   :  { %224 = vperm.xlu1 %1319, %v40_v0   ;;  %v391_v35 = vld [vmem:[%s1954_s4 + $0x70] sm:$0xff]  ;;  %v33_v48 = vld [vmem:[%s1950_s0] sm:$0x77] }
  0x17   :  { %v86_v52 = vrot.slane %v33_v48, %v85_v44  ;;  %v90_v53 = vrot.slane %v33_v48, %v89_v45  ;;  %v152_v54 = vrot.slane %v33_v48, %v151_v46  ;;  %v156_v55 = vrot.slane %v33_v48, %v155_v47 }
  0x18   :  { %69 = vperm.xlu0 %1329, %v39_v1   ;;  %v234_v57 = vrot.slane %v33_v48, %v233_v50  ;;  %v238_v58 = vrot.slane %v33_v48, %v237_v51 }
  0x19   :  { %v1549_v60 = vrot.slane %v86_v52, %v85_v44  ;;  %v1551_v61 = vrot.slane %v90_v53, %v85_v44  ;;  %v1553_v62 = vrot.slane %v152_v54, %v151_v46  ;;  %v1555_v63 = vrot.slane %v156_v55, %v151_v46 }
  0x1a   :  { %1320 = vset.pattern.permute.xlu1 %v1359_v5 }
  0x1b   :  { %134 = vperm.xlu1 %1320, %v38_v8  }
  0x1c   :  { %64 = vperm.xlu0 %1329, %v38_v8  }
  0x1f   :  { %1323 = vset.pattern.permute.xlu1 %v1358_v3 }
  0x20   :  { %326 = vperm.xlu1 %1323, %v288_v9   ;;  %54 = vperm.xlu0 %1329, %v36_v10  }
  0x24   :  { %59 = vperm.xlu1 %1323, %v37_v6   ;;  %316 = vperm.xlu0 %1329, %v286_v11  }
  0x28   :  { %1324 = vset.pattern.permute.xlu1 %v1357_v2  ;;  %44 = vperm.xlu0 %1329, %v34_v12  }
  0x29   :  { %216 = vperm.xlu1 %1324, %v38_v8  }
  0x2c   :  { %306 = vperm.xlu0 %1329, %v284_v13  }
  0x2d   :  { %1325 = vset.pattern.permute.xlu1 %v1358_v3 }
  0x2e   :  { %321 = vperm.xlu1 %1325, %v287_v14  }
  0x30   :  { %301 = vperm.xlu0 %1329, %v283_v15  }
  0x32   :  { %1326 = vset.pattern.permute.xlu1 %v1359_v5 }
  0x33   :  { %126 = vperm.xlu1 %1326, %v36_v10  }
  0x34   :  { %291 = vperm.xlu0 %1329, %v281_v16  }
  0x37   :  { %1327 = vset.pattern.permute.xlu1 %v1357_v2 }
  0x38   :  { %212 = vperm.xlu1 %1327, %v37_v6   ;;  %400 = vperm.xlu0 %1329, %v378_v17   ;;  %v1563_v6 = vrot.slane %v238_v58, %v233_v50 }
  0x3c   :  { %1328 = vset.pattern.permute.xlu1 %v1358_v3  ;;  %410 = vperm.xlu0 %1329, %v380_v18  }
  0x3d   :  { %49 = vperm.xlu1 %1328, %v35_v7  }
  0x40   :  { %420 = vperm.xlu0 %1329, %v382_v19  }
  0x41   :  { %1330 = vset.pattern.permute.xlu1 %v1357_v2 }
  0x42   :  { %208 = vperm.xlu1 %1330, %v36_v10  }
  0x44   :  { %430 = vperm.xlu0 %1329, %v384_v20  }
  0x46   :  { %1331 = vset.pattern.permute.xlu1 %v1358_v3 }
  0x47   :  { %311 = vperm.xlu1 %1331, %v285_v21  }
  0x48   :  { %440 = vperm.xlu0 %1329, %v386_v22  }
  0x4b   :  { %1332 = vset.pattern.permute.xlu1 %v1359_v5  ;;  %v1561_v5 = vrot.slane %v234_v57, %v233_v50 }
  0x4c   :  { %118 = vperm.xlu1 %1332, %v34_v12   ;;  %450 = vperm.xlu0 %1329, %v388_v23  }
  0x50   :  { %1333 = vset.pattern.permute.xlu1 %v1357_v2  ;;  %460 = vperm.xlu0 %1329, %v390_v24  }
  0x51   :  { %204 = vperm.xlu1 %1333, %v35_v7  }
  0x54   :  { %470 = vperm.xlu0 %1329, %v392_v25  }
  0x55   :  { %200 = vperm.xlu1 %1333, %v34_v12  }
  0x59   :  { %1334 = vset.pattern.permute.xlu1 %v1358_v3 }
  0x5a   :  { %296 = vperm.xlu1 %1334, %v282_v26  }
  0x5e   :  { %395 = vperm.xlu1 %1334, %v377_v27  }
  0x62   :  { %405 = vperm.xlu1 %1334, %v379_v29  }
  0x66   :  { %415 = vperm.xlu1 %1334, %v381_v30  }
  0x6a   :  { %425 = vperm.xlu1 %1334, %v383_v31  }
  0x6e   :  { %435 = vperm.xlu1 %1334, %v385_v32  }
  0x72   :  { %445 = vperm.xlu1 %1334, %v387_v33  }
  0x76   :  { %455 = vperm.xlu1 %1334, %v389_v34  }
  0x7a   :  { %465 = vperm.xlu1 %1334, %v391_v35  }
  0x7d   :  { %v75_v36 = vpop.permute.xlu1 %74  ;;  %v1531_v37 = vpop.permute.xlu0 %220 }
  0x7e   :  { %v113_v29 = vmul.f32 %v1549_v60, %v75_v36  ;;  %v114_v30 = vmul.f32 %v1551_v61, %v75_v36  ;;  %v260_v32 = vmul.f32 %v1563_v6, %v1531_v37 }
  0x82   :  { %v143_v39 = vpop.permute.xlu1 %142  ;;  %v147_v40 = vpop.permute.xlu0 %146 }
  0x83   :  { %v181_v1 = vmul.f32 %v1553_v62, %v147_v40  ;;  %v182_v2 = vmul.f32 %v1555_v63, %v147_v40  ;;  %v179_v25 = vmul.f32 %v1553_v62, %v143_v39  ;;  %v180_v26 = vmul.f32 %v1555_v63, %v143_v39 }
  0x84   :  { %v259_v39 = vmul.f32 %v1561_v5, %v1531_v37 }
  0x85   :  { %v195_v44 = vadd.f32 %v179_v25, %v113_v29  ;;  %v196_v45 = vadd.f32 %v180_v26, %v114_v30 }
  0x86   :  { %v1536_v42 = vpop.permute.xlu0 %130 }
  0x87   :  { %v229_v43 = vpop.permute.xlu1 %228 }
  0x88   :  { %v263_v11 = vmul.f32 %v1561_v5, %v229_v43  ;;  %v264_v12 = vmul.f32 %v1563_v6, %v229_v43 }
  0x8a   :  { %v1545_v49 = vpop.permute.xlu0 %122 }
  0x8c   :  { %v139_v56 = vpop.permute.xlu1 %138 }
  0x8d   :  { %v178_v27 = vmul.f32 %v1555_v63, %v139_v56  ;;  %v177_v31 = vmul.f32 %v1553_v62, %v139_v56 }
  0x8f   :  { %v80_v59 = vpop.permute.xlu0 %79 }
  0x90   :  { %v115_v3 = vmul.f32 %v1549_v60, %v80_v59  ;;  %v116_v4 = vmul.f32 %v1551_v61, %v80_v59 }
  0x91   :  { %v225_v0 = vpop.permute.xlu1 %224 }
  0x92   :  { %v197_v8 = vadd.f32 %v181_v1, %v115_v3  ;;  %v198_v9 = vadd.f32 %v182_v2, %v116_v4  ;;  %v261_v33 = vmul.f32 %v1561_v5, %v225_v0  ;;  %v262_v34 = vmul.f32 %v1563_v6, %v225_v0 }
  0x93   :  { %v70_v7 = vpop.permute.xlu0 %69  ;;  %v173_v3 = vmul.f32 %v1553_v62, %v1536_v42  ;;  %v174_v4 = vmul.f32 %v1555_v63, %v1536_v42 }
  0x94   :  { %v279_v13 = vadd.f32 %v263_v11, %v197_v8  ;;  %v280_v14 = vadd.f32 %v264_v12, %v198_v9  ;;  %v112_v22 = vmul.f32 %v1551_v61, %v70_v7  ;;  %v111_v23 = vmul.f32 %v1549_v60, %v70_v7 }
  0x95   :  { %v277_v36 = vadd.f32 %v261_v33, %v195_v44  ;;  %v278_v48 = vadd.f32 %v262_v34, %v196_v45 }
  0x96   :  { %v135_v10 = vpop.permute.xlu1 %134  ;;  %v194_v35 = vadd.f32 %v178_v27, %v112_v22  ;;  %v193_v43 = vadd.f32 %v177_v31, %v111_v23 }
  0x97   :  { %v65_v15 = vpop.permute.xlu0 %64  ;;  %v175_v8 = vmul.f32 %v1553_v62, %v135_v10  ;;  %v176_v9 = vmul.f32 %v1555_v63, %v135_v10 }
  0x98   :  { %v276_v47 = vadd.f32 %v260_v32, %v194_v35  ;;  %v275_v50 = vadd.f32 %v259_v39, %v193_v43  ;;  %v109_v11 = vmul.f32 %v1549_v60, %v65_v15 }
  0x9a   :  { %v191_v27 = vadd.f32 %v175_v8, %v109_v11  ;;  %v170_v8 = vmul.f32 %v1555_v63, %v1545_v49 }
  0x9b   :  { %v327_v16 = vpop.permute.xlu1 %326  ;;  %v55_v24 = vpop.permute.xlu0 %54 }
  0x9c   :  { %v343_v17 = vadd.f32 %v327_v16, %v279_v13  ;;  %v344_v18 = vadd.f32 %v327_v16, %v280_v14  ;;  %v110_v13 = vmul.f32 %v1551_v61, %v65_v15  ;;  %v106_v14 = vmul.f32 %v1551_v61, %v55_v24 }
  0x9d   :  { %v105_v42 = vmul.f32 %v1549_v60, %v55_v24 }
  0x9e   :  { %v360_v19 = vmax.f32 %v344_v18, 0.0  ;;  %v359_v20 = vmax.f32 %v343_v17, 0.0  ;;  %v192_v29 = vadd.f32 %v176_v9, %v110_v13 }
  0x9f   :  { %v60_v21 = vpop.permute.xlu1 %59  ;;  %v317_v46 = vpop.permute.xlu0 %316 }
  0xa0   :  { %538 = vmatprep.subr.mxu0 %v360_v19  ;;  %v340_v52 = vadd.f32 %v317_v46, %v276_v47  ;;  %v339_v55 = vadd.f32 %v317_v46, %v275_v50  ;;  %v108_v7 = vmul.f32 %v1551_v61, %v60_v21  ;;  %v107_v12 = vmul.f32 %v1549_v60, %v60_v21 }
  0xa1   :  { %539 = vmatpush1.msra.mxu0 %v359_v20 }
  0xa2   :  { %v356_v58 = vmax.f32 %v340_v52, 0.0  ;;  %v355_v0 = vmax.f32 %v339_v55, 0.0  ;;  %v190_v20 = vadd.f32 %v174_v4, %v108_v7  ;;  %v189_v23 = vadd.f32 %v173_v3, %v107_v12 }
  0xa3   :  { %v45_v1 = vpop.permute.xlu0 %44  ;;  %v169_v7 = vmul.f32 %v1553_v62, %v1545_v49 }
  0xa4   :  { %v217_v40 = vpop.permute.xlu1 %216  ;;  %v101_v3 = vmul.f32 %v1549_v60, %v45_v1  ;;  %v102_v4 = vmul.f32 %v1551_v61, %v45_v1 }
  0xa5   :  { %v257_v10 = vmul.f32 %v1561_v5, %v217_v40  ;;  %v258_v22 = vmul.f32 %v1563_v6, %v217_v40 }
  0xa7   :  { %v307_v15 = vpop.permute.xlu0 %306  ;;  %v273_v34 = vadd.f32 %v257_v10, %v191_v27  ;;  %v274_v35 = vadd.f32 %v258_v22, %v192_v29  ;;  %v365_v27 = vld [vmem:[%s1953_s3 + $0x20] sm:$0xff]  ;;  %v366_v29 = vld [vmem:[%s1953_s3 + $0x28] sm:$0xff] }
  0xa9   :  { %v322_v51 = vpop.permute.xlu1 %321 }
  0xaa   :  { %v341_v53 = vadd.f32 %v322_v51, %v277_v36  ;;  %v342_v54 = vadd.f32 %v322_v51, %v278_v48 }
  0xab   :  { %v302_v46 = vpop.permute.xlu0 %301 }
  0xac   :  { %v357_v56 = vmax.f32 %v341_v53, 0.0  ;;  %v358_v57 = vmax.f32 %v342_v54, 0.0 }
  0xae   :  { %v127_v59 = vpop.permute.xlu1 %126  ;;  %540 = vmatprep.subr.mxu0 %v358_v57 }
  0xaf   :  { %541 = vmatpush1.msra.mxu0 %v357_v56  ;;  %v172_v16 = vmul.f32 %v1555_v63, %v127_v59  ;;  %v171_v18 = vmul.f32 %v1553_v62, %v127_v59 }
  0xb0   :  { %542 = vmatprep.subr.mxu0 %v356_v58 }
  0xb1   :  { %543 = vmatpush1.msra.mxu0 %v355_v0  ;;  %v188_v30 = vadd.f32 %v172_v16, %v106_v14  ;;  %v187_v31 = vadd.f32 %v171_v18, %v105_v42  ;;  %v292_v18 = vpop.permute.xlu0 %291 }
  0xb3   :  { %v213_v37 = vpop.permute.xlu1 %212 }
  0xb4   :  { %v256_v17 = vmul.f32 %v1563_v6, %v213_v37  ;;  %v255_v19 = vmul.f32 %v1561_v5, %v213_v37 }
  0xb6   :  { %v272_v24 = vadd.f32 %v256_v17, %v190_v20  ;;  %v271_v32 = vadd.f32 %v255_v19, %v189_v23 }
  0xb8   :  { %v50_v2 = vpop.permute.xlu1 %49  ;;  %v336_v45 = vadd.f32 %v307_v15, %v272_v24  ;;  %v335_v47 = vadd.f32 %v307_v15, %v271_v32  ;;  %v362_v15 = vld [vmem:[%s1953_s3 + $0x8] sm:$0xff]  ;;  %v368_v24 = vld [vmem:[%s1953_s3 + $0x38] sm:$0xff] }
  0xb9   :  { %v103_v0 = vmul.f32 %v1549_v60, %v50_v2  ;;  %v104_v37 = vmul.f32 %v1551_v61, %v50_v2  ;;  %v370_v32 = vld [vmem:[%s1953_s3 + $0x48] sm:$0xff] }
  0xba   :  { %v352_v53 = vmax.f32 %v336_v45, 0.0  ;;  %v351_v54 = vmax.f32 %v335_v47, 0.0 }
  0xbb   :  { %v185_v60 = vadd.f32 %v169_v7, %v103_v0  ;;  %v186_v17 = vadd.f32 %v170_v8, %v104_v37 }
  0xbd   :  { %v209_v21 = vpop.permute.xlu1 %208 }
  0xbe   :  { %v253_v25 = vmul.f32 %v1561_v5, %v209_v21  ;;  %v254_v26 = vmul.f32 %v1563_v6, %v209_v21 }
  0xc0   :  { %v270_v33 = vadd.f32 %v254_v26, %v188_v30  ;;  %v269_v39 = vadd.f32 %v253_v25, %v187_v31  ;;  %v363_v25 = vld [vmem:[%s1953_s3 + $0x10] sm:$0xff]  ;;  %v364_v26 = vld [vmem:[%s1953_s3 + $0x18] sm:$0xff]  ;;  %v369_v31 = vld [vmem:[%s1953_s3 + $0x40] sm:$0xff] }
  0xc1   :  { %v367_v30 = vld [vmem:[%s1953_s3 + $0x30] sm:$0xff] }
  0xc2   :  { %v312_v43 = vpop.permute.xlu1 %311  ;;  %v334_v50 = vadd.f32 %v302_v46, %v270_v33  ;;  %v333_v51 = vadd.f32 %v302_v46, %v269_v39  ;;  %v371_v33 = vld [vmem:[%s1953_s3 + $0x50] sm:$0xff]  ;;  %v374_v39 = vld [vmem:[%s1953_s3 + $0x68] sm:$0xff] }
  0xc3   :  { %v337_v44 = vadd.f32 %v312_v43, %v273_v34  ;;  %v338_v40 = vadd.f32 %v312_v43, %v274_v35  ;;  %v372_v34 = vld [vmem:[%s1953_s3 + $0x58] sm:$0xff]  ;;  %v373_v35 = vld [vmem:[%s1953_s3 + $0x60] sm:$0xff]  ;;  %v375_v43 = vld [vmem:[%s1953_s3 + $0x70] sm:$0xff] }
  0xc4   :  { %v350_v55 = vmax.f32 %v334_v50, 0.0  ;;  %v349_v56 = vmax.f32 %v333_v51, 0.0  ;;  %v401_v50 = vpop.permute.xlu0 %400 }
  0xc5   :  { %v353_v36 = vmax.f32 %v337_v44, 0.0  ;;  %v354_v48 = vmax.f32 %v338_v40, 0.0  ;;  %v376_v44 = vld [vmem:[%s1953_s3 + $0x78] sm:$0xff] }
  0xc7   :  { %v119_v52 = vpop.permute.xlu1 %118  ;;  %544 = vmatprep.subr.mxu0 %v354_v48 }
  0xc8   :  { %545 = vmatpush1.msra.mxu0 %v353_v36  ;;  %v167_v58 = vmul.f32 %v1553_v62, %v119_v52  ;;  %v168_v59 = vmul.f32 %v1555_v63, %v119_v52 }
  0xc9   :  { %546 = vmatprep.subr.mxu0 %v352_v53 }
  0xca   :  { %547 = vmatpush1.msra.mxu0 %v351_v54  ;;  %v183_v13 = vadd.f32 %v167_v58, %v101_v3  ;;  %v184_v14 = vadd.f32 %v168_v59, %v102_v4  ;;  %v411_v4 = vpop.permute.xlu0 %410 }
  0xcb   :  { %548 = vmatprep.subr.mxu0 %v350_v55 }
  0xcc   :  { %v205_v57 = vpop.permute.xlu1 %204  ;;  %549 = vmatpush1.msra.mxu0 %v349_v56 }
  0xcd   :  { %v251_v9 = vmul.f32 %v1561_v5, %v205_v57  ;;  %v252_v11 = vmul.f32 %v1563_v6, %v205_v57 }
  0xcf   :  { %v267_v42 = vadd.f32 %v251_v9, %v185_v60  ;;  %v268_v62 = vadd.f32 %v252_v11, %v186_v17 }
  0xd0   :  { %v201_v12 = vpop.permute.xlu1 %200 }
  0xd1   :  { %v249_v16 = vmul.f32 %v1561_v5, %v201_v12  ;;  %v250_v2 = vmul.f32 %v1563_v6, %v201_v12  ;;  %v361_v6 = vld [vmem:[%s1953_s3] sm:$0xff]  ;;  %s1202_s3 = sshll.u32 %s1362_s13, 4  ;;  %s1203_s3 = int_to_ptr.vmem [resolvable:$true] %s1202_s3 }
  0xd2   :  { %p1340_p1 = scmp.lt.s32.totalorder %s1203_s3, %s1203_s3 }
  0xd3   :  { %v265_v61 = vadd.f32 %v249_v16, %v183_v13  ;;  %v266_v1 = vadd.f32 %v250_v2, %v184_v14 }
  0xd5   :  { %v297_v19 = vpop.permute.xlu1 %296  ;;  %v330_v20 = vadd.f32 %v292_v18, %v266_v1  ;;  %v329_v10 = vadd.f32 %v292_v18, %v265_v61 }
  0xd6   :  { %v331_v49 = vadd.f32 %v297_v19, %v267_v42  ;;  %v332_v63 = vadd.f32 %v297_v19, %v268_v62  ;;  %v421_v42 = vpop.permute.xlu0 %420 }
  0xd7   :  { %v346_v23 = vmax.f32 %v330_v20, 0.0  ;;  %v345_v5 = vmax.f32 %v329_v10, 0.0 }
  0xd8   :  { %v347_v22 = vmax.f32 %v331_v49, 0.0  ;;  %v348_v21 = vmax.f32 %v332_v63, 0.0 }
  0xd9   :  { %v396_v40 = vpop.permute.xlu1 %395 }
  0xda   :  { %550 = vmatprep.subr.mxu0 %v348_v21 }
  0xdb   :  { %551 = vmatpush1.msra.mxu0 %v347_v22 }
  0xdc   :  { %552 = vmatprep.subr.mxu0 %v346_v23 }
  0xdd   :  { %553 = vmatpush1.msra.mxu0 %v345_v5  ;;  %v406_v56 = vpop.permute.xlu1 %405 }
  0xde   :  { %1210 = vmatmul.mubr.msk.f32.vlgmr.msra.gmra.mxu0 %vm473_vm0, %v361_v6 }
  0xdf   :  { %592 = vmatprep.mubr.f32.mxu0 %v1360_v28 }
  0xe1   :  { %v416_v14 = vpop.permute.xlu1 %415 }
  0xe2   :  { %1211 = vmatmul.mubr.msk.f32.gmra.mxu0 %vm473_vm0, %v362_v15 }
  0xe3   :  { %598 = vmatprep.mubr.f32.mxu0 %v1360_v28 }
  0xe5   :  { %v426_v10 = vpop.permute.xlu1 %425 }
  0xe6   :  { %1212 = vmatmul.mubr.msk.f32.gmra.mxu0 %vm473_vm0, %v363_v25  ;;  %v431_v25 = vpop.permute.xlu0 %430 }
  0xe7   :  { %604 = vmatprep.mubr.f32.mxu0 %v1360_v28 }
  0xea   :  { %1213 = vmatmul.mubr.msk.f32.gmra.mxu0 %vm473_vm0, %v364_v26 }
  0xeb   :  { %610 = vmatprep.mubr.f32.mxu0 %v1360_v28 }
  0xee   :  { %1214 = vmatmul.mubr.msk.f32.gmra.mxu0 %vm473_vm0, %v365_v27 }
  0xef   :  { %616 = vmatprep.mubr.f32.mxu0 %v1360_v28 }
  0xf2   :  { %1215 = vmatmul.mubr.msk.f32.gmra.mxu0 %vm473_vm0, %v366_v29 }
  0xf3   :  { %622 = vmatprep.mubr.f32.mxu0 %v1360_v28 }
  0xf6   :  { %1216 = vmatmul.mubr.msk.f32.gmra.mxu0 %vm473_vm0, %v367_v30 }
  0xf7   :  { %628 = vmatprep.mubr.f32.mxu0 %v1360_v28 }
  0xfa   :  { %1217 = vmatmul.mubr.msk.f32.gmra.mxu0 %vm473_vm0, %v368_v24 }
  0xfb   :  { %634 = vmatprep.mubr.f32.mxu0 %v1360_v28 }
  0xfe   :  { %1218 = vmatmul.mubr.msk.f32.gmra.mxu0 %vm473_vm0, %v369_v31 }
  0xff   :  { %640 = vmatprep.mubr.f32.mxu0 %v1360_v28 }
 0x102   :  { %1219 = vmatmul.mubr.msk.f32.gmra.mxu0 %vm473_vm0, %v370_v32  ;;  %v436_v32 = vpop.permute.xlu1 %435 }
 0x103   :  { %646 = vmatprep.mubr.f32.mxu0 %v1360_v28 }
 0x106   :  { %1220 = vmatmul.mubr.msk.f32.gmra.mxu0 %vm473_vm0, %v371_v33 }
 0x107   :  { %652 = vmatprep.mubr.f32.mxu0 %v1360_v28 }
 0x10a   :  { %1221 = vmatmul.mubr.msk.f32.gmra.mxu0 %vm473_vm0, %v372_v34 }
 0x10b   :  { %658 = vmatprep.mubr.f32.mxu0 %v1360_v28 }
 0x10e   :  { %1222 = vmatmul.mubr.msk.f32.gmra.mxu0 %vm473_vm0, %v373_v35 }
 0x10f   :  { %664 = vmatprep.mubr.f32.mxu0 %v1360_v28 }
 0x112   :  { %1223 = vmatmul.mubr.msk.f32.gmra.mxu0 %vm473_vm0, %v374_v39 }
 0x113   :  { %670 = vmatprep.mubr.f32.mxu0 %v1360_v28 }
 0x116   :  { %1224 = vmatmul.mubr.msk.f32.gmra.mxu0 %vm473_vm0, %v375_v43 }
 0x117   :  { %676 = vmatprep.mubr.f32.mxu0 %v1360_v28 }
 0x11a   :  { %1225 = vmatmul.mubr.msk.f32.gmra.mxu0 %vm473_vm0, %v376_v44 }
 0x19e   :  { %v588_v45 = vpop.f32.mrf.mxu0 }
 0x19f   :  { %v589_v46 = vadd.f32 %v588_v45, %v396_v40 }
 0x1a0   :  { %v590_v47 = vpop.f32.mrf.mxu0 }
 0x1a1   :  { %v683_v36 = vmax.f32 %v589_v46, 0.0  ;;  %v591_v48 = vadd.f32 %v590_v47, %v396_v40  ;;  %v441_v40 = vpop.permute.xlu0 %440 }
 0x1a2   :  { %v594_v51 = vpop.f32.mrf.mxu0 }
 0x1a3   :  { %v684_v52 = vmax.f32 %v591_v48, 0.0  ;;  %v595_v53 = vadd.f32 %v594_v51, %v401_v50  ;;  %715 = vmax.xlane.f32.xlu1 %v683_v36  ;;  %v446_v51 = vpop.permute.xlu1 %445 }
 0x1a4   :  { %v596_v54 = vpop.f32.mrf.mxu0 }
 0x1a5   :  { %v597_v55 = vadd.f32 %v596_v54, %v401_v50  ;;  %747 = vmax.xlane.f32.xlu0 %v684_v52  ;;  %v685_v58 = vmax.f32 %v595_v53, 0.0 }
 0x1a6   :  { %v600_v57 = vpop.f32.mrf.mxu0 }
 0x1a7   :  { %v686_v59 = vmax.f32 %v597_v55, 0.0  ;;  %v601_v0 = vadd.f32 %v600_v57, %v406_v56 }
 0x1a8   :  { %v602_v37 = vpop.f32.mrf.mxu0 }
 0x1a9   :  { %v603_v3 = vadd.f32 %v602_v37, %v406_v56  ;;  %717 = vmax.xlane.f32.xlu0 %v685_v58  ;;  %749 = vmax.xlane.f32.xlu1 %v686_v59  ;;  %v687_v8 = vmax.f32 %v601_v0, 0.0  ;;  %v451_v58 = vpop.permute.xlu0 %450 }
 0x1aa   :  { %v606_v7 = vpop.f32.mrf.mxu0 }
 0x1ab   :  { %v688_v9 = vmax.f32 %v603_v3, 0.0  ;;  %v607_v11 = vadd.f32 %v606_v7, %v411_v4 }
 0x1ac   :  { %v608_v12 = vpop.f32.mrf.mxu0 }
 0x1ad   :  { %v609_v13 = vadd.f32 %v608_v12, %v411_v4  ;;  %719 = vmax.xlane.f32.xlu0 %v687_v8  ;;  %751 = vmax.xlane.f32.xlu1 %v688_v9  ;;  %v689_v2 = vmax.f32 %v607_v11, 0.0  ;;  %v456_v8 = vpop.permute.xlu1 %455 }
 0x1ae   :  { %v612_v16 = vpop.f32.mrf.mxu0 }
 0x1af   :  { %v690_v60 = vmax.f32 %v609_v13, 0.0  ;;  %v613_v17 = vadd.f32 %v612_v16, %v416_v14 }
 0x1b0   :  { %v614_v61 = vpop.f32.mrf.mxu0 }
 0x1b1   :  { %v615_v1 = vadd.f32 %v614_v61, %v416_v14  ;;  %721 = vmax.xlane.f32.xlu0 %v689_v2  ;;  %753 = vmax.xlane.f32.xlu1 %v690_v60  ;;  %v691_v18 = vmax.f32 %v613_v17, 0.0  ;;  %v461_v2 = vpop.permute.xlu0 %460 }
 0x1b2   :  { %v618_v62 = vpop.f32.mrf.mxu0 }
 0x1b3   :  { %v692_v19 = vmax.f32 %v615_v1, 0.0  ;;  %v619_v49 = vadd.f32 %v618_v62, %v421_v42 }
 0x1b4   :  { %v620_v63 = vpop.f32.mrf.mxu0 }
 0x1b5   :  { %v621_v20 = vadd.f32 %v620_v63, %v421_v42  ;;  %723 = vmax.xlane.f32.xlu0 %v691_v18  ;;  %755 = vmax.xlane.f32.xlu1 %v692_v19  ;;  %v693_v21 = vmax.f32 %v619_v49, 0.0  ;;  %v466_v18 = vpop.permute.xlu1 %465 }
 0x1b6   :  { %v624_v22 = vpop.f32.mrf.mxu0 }
 0x1b7   :  { %v694_v23 = vmax.f32 %v621_v20, 0.0  ;;  %v625_v5 = vadd.f32 %v624_v22, %v426_v10  ;;  %v1028_v22 = vld [vmem:[%s1955_s5 + $0x78] sm:$0xff] }
 0x1b8   :  { %v626_v6 = vpop.f32.mrf.mxu0  ;;  %1256 = vmatpush3.msra.mxu1 %v1028_v22 }
 0x1b9   :  { %v627_v15 = vadd.f32 %v626_v6, %v426_v10  ;;  %725 = vmax.xlane.f32.xlu0 %v693_v21  ;;  %757 = vmax.xlane.f32.xlu1 %v694_v23  ;;  %v695_v27 = vmax.f32 %v625_v5, 0.0  ;;  %v1027_v23 = vld [vmem:[%s1955_s5 + $0x70] sm:$0xff]  ;;  %v471_v5 = vpop.permute.xlu0 %470 }
 0x1ba   :  { %v630_v26 = vpop.f32.mrf.mxu0  ;;  %1257 = vmatprep.subr.mxu1 %v1360_v28 }
 0x1bb   :  { %v696_v29 = vmax.f32 %v627_v15, 0.0  ;;  %v631_v30 = vadd.f32 %v630_v26, %v431_v25  ;;  %1258 = vmatpush3.msra.mxu1 %v1027_v23 }
 0x1bc   :  { %v632_v24 = vpop.f32.mrf.mxu0  ;;  %1259 = vmatprep.subr.mxu1 %v1360_v28 }
 0x1bd   :  { %v633_v31 = vadd.f32 %v632_v24, %v431_v25  ;;  %727 = vmax.xlane.f32.xlu0 %v695_v27  ;;  %759 = vmax.xlane.f32.xlu1 %v696_v29  ;;  %v697_v34 = vmax.f32 %v631_v30, 0.0  ;;  %v1026_v29 = vld [vmem:[%s1955_s5 + $0x68] sm:$0xff] }
 0x1be   :  { %v636_v33 = vpop.f32.mrf.mxu0  ;;  %1260 = vmatpush3.msra.mxu1 %v1026_v29 }
 0x1bf   :  { %v698_v35 = vmax.f32 %v633_v31, 0.0  ;;  %v637_v39 = vadd.f32 %v636_v33, %v436_v32  ;;  %1261 = vmatprep.subr.mxu1 %v1360_v28  ;;  %v1024_v33 = vld [vmem:[%s1955_s5 + $0x58] sm:$0xff] }
 0x1c0   :  { %v638_v43 = vpop.f32.mrf.mxu0 }
 0x1c1   :  { %v639_v44 = vadd.f32 %v638_v43, %v436_v32  ;;  %729 = vmax.xlane.f32.xlu0 %v697_v34  ;;  %761 = vmax.xlane.f32.xlu1 %v698_v35  ;;  %v699_v46 = vmax.f32 %v637_v39, 0.0  ;;  %v1025_v32 = vld [vmem:[%s1955_s5 + $0x60] sm:$0xff]  ;;  %v1023_v34 = vld [vmem:[%s1955_s5 + $0x50] sm:$0xff]  ;;  %v1022_v35 = vld [vmem:[%s1955_s5 + $0x48] sm:$0xff] }
 0x1c2   :  { %v642_v45 = vpop.f32.mrf.mxu0  ;;  %1262 = vmatpush3.msra.mxu1 %v1025_v32  ;;  %v1021_v39 = vld [vmem:[%s1955_s5 + $0x40] sm:$0xff]  ;;  %v1020_v43 = vld [vmem:[%s1955_s5 + $0x38] sm:$0xff] }
 0x1c3   :  { %v700_v47 = vmax.f32 %v639_v44, 0.0  ;;  %v643_v36 = vadd.f32 %v642_v45, %v441_v40  ;;  %1263 = vmatprep.subr.mxu1 %v1360_v28  ;;  %v1019_v44 = vld [vmem:[%s1955_s5 + $0x30] sm:$0xff]  ;;  %v1017_v45 = vld [vmem:[%s1955_s5 + $0x20] sm:$0xff] }
 0x1c4   :  { %v644_v48 = vpop.f32.mrf.mxu0  ;;  %1264 = vmatpush3.msra.mxu1 %v1024_v33 }
 0x1c5   :  { %v645_v50 = vadd.f32 %v644_v48, %v441_v40  ;;  %731 = vmax.xlane.f32.xlu0 %v699_v46  ;;  %763 = vmax.xlane.f32.xlu1 %v700_v47  ;;  %v701_v53 = vmax.f32 %v643_v36, 0.0  ;;  %v1018_v40 = vld [vmem:[%s1955_s5 + $0x28] sm:$0xff]  ;;  %v1016_v46 = vld [vmem:[%s1955_s5 + $0x18] sm:$0xff]  ;;  %v1015_v47 = vld [vmem:[%s1955_s5 + $0x10] sm:$0xff] }
 0x1c6   :  { %v648_v52 = vpop.f32.mrf.mxu0  ;;  %1265 = vmatprep.subr.mxu1 %v1360_v28  ;;  %v1014_v36 = vld [vmem:[%s1955_s5 + $0x8] sm:$0xff]  ;;  %v1013_v48 = vld [vmem:[%s1955_s5] sm:$0xff] }
 0x1c7   :  { %v702_v54 = vmax.f32 %v645_v50, 0.0  ;;  %v649_v55 = vadd.f32 %v648_v52, %v446_v51  ;;  %1266 = vmatpush3.msra.mxu1 %v1023_v34 }
 0x1c8   :  { %v650_v56 = vpop.f32.mrf.mxu0  ;;  %1267 = vmatprep.subr.mxu1 %v1360_v28 }
 0x1c9   :  { %v651_v57 = vadd.f32 %v650_v56, %v446_v51  ;;  %733 = vmax.xlane.f32.xlu0 %v701_v53  ;;  %765 = vmax.xlane.f32.xlu1 %v702_v54  ;;  %v703_v0 = vmax.f32 %v649_v55, 0.0 }
 0x1ca   :  { %v654_v59 = vpop.f32.mrf.mxu0  ;;  %1268 = vmatpush3.msra.mxu1 %v1022_v35 }
 0x1cb   :  { %v704_v37 = vmax.f32 %v651_v57, 0.0  ;;  %v655_v3 = vadd.f32 %v654_v59, %v451_v58  ;;  %1269 = vmatprep.subr.mxu1 %v1360_v28 }
 0x1cc   :  { %v656_v4 = vpop.f32.mrf.mxu0  ;;  %1270 = vmatpush3.msra.mxu1 %v1021_v39 }
 0x1cd   :  { %v657_v7 = vadd.f32 %v656_v4, %v451_v58  ;;  %735 = vmax.xlane.f32.xlu0 %v703_v0  ;;  %767 = vmax.xlane.f32.xlu1 %v704_v37  ;;  %v705_v11 = vmax.f32 %v655_v3, 0.0 }
 0x1ce   :  { %v660_v9 = vpop.f32.mrf.mxu0  ;;  %1271 = vmatprep.subr.mxu1 %v1360_v28 }
 0x1cf   :  { %v706_v12 = vmax.f32 %v657_v7, 0.0  ;;  %v661_v13 = vadd.f32 %v660_v9, %v456_v8  ;;  %1272 = vmatpush3.msra.mxu1 %v1020_v43  ;;  %v796_v9 = vand.u32 127, %v83_v38 }
 0x1d0   :  { %v662_v14 = vpop.f32.mrf.mxu0  ;;  %1273 = vmatprep.subr.mxu1 %v1360_v28 }
 0x1d1   :  { %v663_v16 = vadd.f32 %v662_v14, %v456_v8  ;;  %737 = vmax.xlane.f32.xlu0 %v705_v11  ;;  %769 = vmax.xlane.f32.xlu1 %v706_v12  ;;  %v707_v17 = vmax.f32 %v661_v13, 0.0  ;;  %v801_v13 = vadd.s32 4294967288, %v796_v9  ;;  %v808_v14 = vadd.s32 4294967280, %v796_v9 }
 0x1d2   :  { %v666_v60 = vpop.f32.mrf.mxu0  ;;  %1274 = vmatpush3.msra.mxu1 %v1019_v44  ;;  %v836_v38 = vadd.s32 4294967248, %v796_v9  ;;  %v864_v22 = vadd.s32 4294967216, %v796_v9  ;;  %v899_v32 = vadd.s32 4294967176, %v796_v9 }
 0x1d3   :  { %v708_v61 = vmax.f32 %v663_v16, 0.0  ;;  %v667_v1 = vadd.f32 %v666_v60, %v461_v2  ;;  %1275 = vmatprep.subr.mxu1 %v1360_v28  ;;  %v815_v60 = vadd.s32 4294967272, %v796_v9 }
 0x1d4   :  { %v668_v42 = vpop.f32.mrf.mxu0  ;;  %1276 = vmatpush3.msra.mxu1 %v1018_v40  ;;  %v1826_v35 = vsub.s32 %v864_v22, %v1534_v41 }
 0x1d5   :  { %v669_v62 = vadd.f32 %v668_v42, %v461_v2  ;;  %739 = vmax.xlane.f32.xlu0 %v707_v17  ;;  %771 = vmax.xlane.f32.xlu1 %v708_v61  ;;  %v709_v49 = vmax.f32 %v667_v1, 0.0  ;;  %v799_v17 = vsub.s32 %v796_v9, %v1534_v41  ;;  %v804_v61 = vsub.s32 %v801_v13, %v1534_v41 }
 0x1d6   :  { %v672_v19 = vpop.f32.mrf.mxu0  ;;  %1277 = vmatprep.subr.mxu1 %v1360_v28  ;;  %v822_v1 = vadd.s32 4294967264, %v796_v9  ;;  %v829_v42 = vadd.s32 4294967256, %v796_v9  ;;  %v1849_v13 = vsub.s32 %v899_v32, %v1534_v41 }
 0x1d7   :  { %v710_v63 = vmax.f32 %v669_v62, 0.0  ;;  %v673_v20 = vadd.f32 %v672_v19, %v466_v18  ;;  %1278 = vmatpush3.msra.mxu1 %v1017_v45  ;;  %v843_v62 = vadd.s32 4294967240, %v796_v9  ;;  %v850_v19 = vadd.s32 4294967232, %v796_v9 }
 0x1d8   :  { %v674_v10 = vpop.f32.mrf.mxu0  ;;  %1279 = vmatprep.subr.mxu1 %v1360_v28  ;;  %v825_v23 = vsub.s32 %v822_v1, %v1534_v41 }
 0x1d9   :  { %v675_v21 = vadd.f32 %v674_v10, %v466_v18  ;;  %741 = vmax.xlane.f32.xlu0 %v709_v49  ;;  %773 = vmax.xlane.f32.xlu1 %v710_v63  ;;  %v711_v15 = vmax.f32 %v673_v20, 0.0  ;;  %v811_v18 = vsub.s32 %v808_v14, %v1534_v41  ;;  %v857_v49 = vadd.s32 4294967224, %v796_v9 }
 0x1da   :  { %v678_v6 = vpop.f32.mrf.mxu0  ;;  %1280 = vmatpush3.msra.mxu1 %v1016_v46  ;;  %v818_v10 = vsub.s32 %v815_v60, %v1534_v41 }
 0x1db   :  { %v712_v25 = vmax.f32 %v675_v21, 0.0  ;;  %v679_v26 = vadd.f32 %v678_v6, %v471_v5  ;;  %1281 = vmatprep.subr.mxu1 %v1360_v28  ;;  %v871_v21 = vadd.s32 4294967208, %v796_v9  ;;  %v885_v6 = vadd.s32 4294967192, %v796_v9 }
 0x1dc   :  { %v680_v27 = vpop.f32.mrf.mxu0  ;;  %1282 = vmatpush3.msra.mxu1 %v1015_v47  ;;  %v1817_v29 = vsub.s32 %v857_v49, %v1534_v41 }
 0x1dd   :  { %v681_v30 = vadd.f32 %v680_v27, %v471_v5  ;;  %743 = vmax.xlane.f32.xlu0 %v711_v15  ;;  %775 = vmax.xlane.f32.xlu1 %v712_v25  ;;  %v713_v24 = vmax.f32 %v679_v26, 0.0  ;;  %v878_v5 = vadd.s32 4294967200, %v796_v9  ;;  %v832_v15 = vsub.s32 %v829_v42, %v1534_v41 }
 0x1de   :  { %1283 = vmatprep.subr.mxu1 %v1360_v28  ;;  %v839_v25 = vsub.s32 %v836_v38, %v1534_v41  ;;  %v846_v26 = vsub.s32 %v843_v62, %v1534_v41  ;;  %v1814_v27 = vsub.s32 %v850_v19, %v1534_v41  ;;  %v1829_v39 = vsub.s32 %v871_v21, %v1534_v41 }
 0x1df   :  { %v714_v31 = vmax.f32 %v681_v30, 0.0  ;;  %1284 = vmatpush3.msra.mxu1 %v1014_v36  ;;  %v1834_v40 = vsub.s32 %v878_v5, %v1534_v41  ;;  %v1837_v45 = vsub.s32 %v885_v6, %v1534_v41 }
 0x1e0   :  { %1285 = vmatprep.subr.mxu1 %v1360_v28 }
 0x1e1   :  { %745 = vmax.xlane.f32.xlu0 %v713_v24  ;;  %777 = vmax.xlane.f32.xlu1 %v714_v31  ;;  %v892_v31 = vadd.s32 4294967184, %v796_v9 }
 0x1e2   :  { %1286 = vmatpush3.msra.mxu1 %v1013_v48 }
 0x1e3   :  { %1290 = vmatprep.subr.mxu1 %v1360_v28  ;;  %v1846_v9 = vsub.s32 %v892_v31, %v1534_v41 }
 0x22c   :  { %v1760_v50 = vpop.xlane.xlu1 %715 }
 0x22d   :  { %v800_v46 = vrot.slane %v1760_v50, %v799_v17 }
 0x22e   :  { %v1762_v51 = vpop.xlane.xlu0 %747 }
 0x22f   :  { %v926_v47 = vrot.slane %v1762_v51, %v799_v17 }
 0x232   :  { %v1764_v52 = vpop.xlane.xlu0 %717  ;;  %v1766_v53 = vpop.xlane.xlu1 %749 }
 0x233   :  { %v805_v33 = vrot.slane %v1764_v52, %v804_v61  ;;  %v930_v34 = vrot.slane %v1766_v53, %v804_v61 }
 0x235   :  { %v807_v50 = vsel %vm806_vm2, %v805_v33, %v800_v46  ;;  %v931_v51 = vsel %vm806_vm2, %v930_v34, %v926_v47  ;;  %vm904_vm2 = vcmask 1048512  }
 0x236   :  { %v1768_v54 = vpop.xlane.xlu0 %719  ;;  %v1770_v55 = vpop.xlane.xlu1 %751 }
 0x237   :  { %v812_v43 = vrot.slane %v1768_v54, %v811_v18  ;;  %v935_v44 = vrot.slane %v1770_v55, %v811_v18 }
 0x23a   :  { %v1772_v56 = vpop.xlane.xlu0 %721  ;;  %v1774_v57 = vpop.xlane.xlu1 %753 }
 0x23b   :  { %v819_v36 = vrot.slane %v1772_v56, %v818_v10  ;;  %v940_v48 = vrot.slane %v1774_v57, %v818_v10 }
 0x23e   :  { %v1776_v58 = vpop.xlane.xlu0 %723  ;;  %v1778_v59 = vpop.xlane.xlu1 %755 }
 0x23f   :  { %v826_v52 = vrot.slane %v1776_v58, %v825_v23  ;;  %v945_v53 = vrot.slane %v1778_v59, %v825_v23  ;;  %v814_v58 = vsel %vm813_vm3, %v812_v43, %v807_v50  ;;  %v936_v59 = vsel %vm813_vm3, %v935_v44, %v931_v51  ;;  %v1111_v50 = vld [vmem:[%s1957_s7 + $0x20] sm:$0xff]  ;;  %v1110_v51 = vld [vmem:[%s1957_s7 + $0x18] sm:$0xff] }
 0x240   :  { %v821_v41 = vsel %vm820_vm4, %v819_v36, %v814_v58  ;;  %v941_v17 = vsel %vm820_vm4, %v940_v48, %v936_v59  ;;  %vm1003_vm3 = vcmask 1040384   ;;  %v1107_v58 = vld [vmem:[%s1957_s7] sm:$0xff] }
 0x241   :  { %v946_v1 = vsel %vm827_vm5, %v945_v53, %v941_v17  ;;  %v1226_v59 = vld [vmem:[%s1956_s6] ss:$0 sm:$0xff] }
 0x242   :  { %v1780_v0 = vpop.xlane.xlu0 %725  ;;  %v1782_v37 = vpop.xlane.xlu1 %757 }
 0x243   :  { %v833_v56 = vrot.slane %v1780_v0, %v832_v15  ;;  %v950_v57 = vrot.slane %v1782_v37, %v832_v15  ;;  %v828_v37 = vsel %vm827_vm5, %v826_v52, %v821_v41 }
 0x245   :  { %v835_v62 = vsel %vm834_vm6, %v833_v56, %v828_v37  ;;  %v951_v18 = vsel %vm834_vm6, %v950_v57, %v946_v1  ;;  %v1109_v56 = vld [vmem:[%s1957_s7 + $0x10] sm:$0xff]  ;;  %v1108_v57 = vld [vmem:[%s1957_s7 + $0x8] sm:$0xff] }
 0x246   :  { %v1784_v3 = vpop.xlane.xlu0 %727  ;;  %v1786_v4 = vpop.xlane.xlu1 %759 }
 0x247   :  { %v840_v14 = vrot.slane %v1784_v3, %v839_v25  ;;  %v955_v60 = vrot.slane %v1786_v4, %v839_v25 }
 0x249   :  { %v842_v19 = vsel %vm841_vm7, %v840_v14, %v835_v62  ;;  %v956_v49 = vsel %vm841_vm7, %v955_v60, %v951_v18 }
 0x24a   :  { %v1788_v7 = vpop.xlane.xlu0 %729  ;;  %v1790_v8 = vpop.xlane.xlu1 %761 }
 0x24b   :  { %v847_v61 = vrot.slane %v1788_v7, %v846_v26  ;;  %v960_v0 = vrot.slane %v1790_v8, %v846_v26 }
 0x24d   :  { %v849_v10 = vsel %vm848_vm8, %v847_v61, %v842_v19  ;;  %v961_v22 = vsel %vm848_vm8, %v960_v0, %v956_v49  ;;  %v1227_v61 = vld [vmem:[%s1958_s8] ss:$0 sm:$0xff] }
 0x24e   :  { %v1793_v11 = vpop.xlane.xlu0 %731  ;;  %v1795_v12 = vpop.xlane.xlu1 %763 }
 0x24f   :  { %v854_v42 = vrot.slane %v1793_v11, %v1814_v27  ;;  %v965_v3 = vrot.slane %v1795_v12, %v1814_v27 }
 0x251   :  { %v856_v21 = vsel %vm855_vm9, %v854_v42, %v849_v10  ;;  %v966_v23 = vsel %vm855_vm9, %v965_v3, %v961_v22 }
 0x252   :  { %v1797_v16 = vpop.xlane.xlu0 %733  ;;  %v1799_v2 = vpop.xlane.xlu1 %765 }
 0x253   :  { %v861_v7 = vrot.slane %v1797_v16, %v1817_v29  ;;  %v970_v8 = vrot.slane %v1799_v2, %v1817_v29 }
 0x255   :  { %v863_v15 = vsel %vm862_vm10, %v861_v7, %v856_v21  ;;  %v971_v25 = vsel %vm862_vm10, %v970_v8, %v966_v23 }
 0x256   :  { %v1804_v63 = vpop.xlane.xlu0 %735  ;;  %v1806_v20 = vpop.xlane.xlu1 %767 }
 0x257   :  { %v868_v11 = vrot.slane %v1804_v63, %v1826_v35  ;;  %v975_v12 = vrot.slane %v1806_v20, %v1826_v35 }
 0x259   :  { %v870_v29 = vsel %vm869_vm11, %v868_v11, %v863_v15 }
 0x25a   :  { %v1819_v30 = vpop.xlane.xlu0 %737  ;;  %v1821_v24 = vpop.xlane.xlu1 %769 }
 0x25b   :  { %v875_v16 = vrot.slane %v1819_v30, %v1829_v39  ;;  %v980_v2 = vrot.slane %v1821_v24, %v1829_v39  ;;  %v976_v30 = vsel %vm869_vm11, %v975_v12, %v971_v25 }
 0x25d   :  { %v877_v32 = vsel %vm876_vm12, %v875_v16, %v870_v29  ;;  %v981_v33 = vsel %vm876_vm12, %v980_v2, %v976_v30 }
 0x25e   :  { %v740_v54 = vpop.xlane.xlu0 %739  ;;  %v772_v55 = vpop.xlane.xlu1 %771 }
 0x25f   :  { %v882_v5 = vrot.slane %v740_v54, %v1834_v40  ;;  %v985_v63 = vrot.slane %v772_v55, %v1834_v40  ;;  %v1114_v54 = vld [vmem:[%s1957_s7 + $0x38] sm:$0xff] }
 0x261   :  { %v884_v34 = vsel %vm883_vm13, %v882_v5, %v877_v32  ;;  %v986_v35 = vsel %vm883_vm13, %v985_v63, %v981_v33 }
 0x262   :  { %v742_v4 = vpop.xlane.xlu0 %741  ;;  %v774_v38 = vpop.xlane.xlu1 %773 }
 0x263   :  { %v889_v26 = vrot.slane %v742_v4, %v1837_v45  ;;  %v990_v27 = vrot.slane %v774_v38, %v1837_v45 }
 0x265   :  { %v891_v44 = vsel %vm890_vm14, %v889_v26, %v884_v34  ;;  %v991_v40 = vsel %vm890_vm14, %v990_v27, %v986_v35 }
 0x266   :  { %v744_v6 = vpop.xlane.xlu0 %743  ;;  %v776_v20 = vpop.xlane.xlu1 %775 }
 0x267   :  { %v896_v24 = vrot.slane %v744_v6, %v1846_v9  ;;  %v995_v31 = vrot.slane %v776_v20, %v1846_v9  ;;  %v1113_v9 = vld [vmem:[%s1957_s7 + $0x30] sm:$0xff] }
 0x269   :  { %v898_v47 = vsel %vm897_vm15, %v896_v24, %v891_v44  ;;  %v996_v36 = vsel %vm897_vm15, %v995_v31, %v991_v40 }
 0x26a   :  { %v746_v39 = vpop.xlane.xlu0 %745  ;;  %v778_v43 = vpop.xlane.xlu1 %777 }
 0x26b   :  { %v903_v45 = vrot.slane %v746_v39, %v1849_v13  ;;  %v1000_v46 = vrot.slane %v778_v43, %v1849_v13  ;;  %v1112_v13 = vld [vmem:[%s1957_s7 + $0x28] sm:$0xff]  ;;  %s1335_s7 = scalar_lea.vmem %s1203_s3, 32 }
 0x26c   :  { %p1336_p0 = scmp.ne.s32.totalorder %s1203_s3, %s1335_s7  ;;  %p1341_p2 = scmp.lt.s32.totalorder %s1335_s7, %s1335_s7 }
 0x26d   :  { %v905_v48 = vsel %vm904_vm2, %v903_v45, %v898_v47  ;;  %v1001_v52 = vsel %vm904_vm2, %v1000_v46, %v996_v36 }
 0x26e   :  { %v1004_v53 = vsel %vm1003_vm3, %v905_v48, %v1001_v52  ;;  %p1342_p3 = por %p1341_p2, %p1340_p1 }
 0x26f   :  { %1007 = vst [vmem:[#allocation2] sm:$0x3] %v1004_v53 }
 0x270   :  { %p1343_p4 = pnand %p1342_p3, %p1336_p0 }
 0x276   :  { %v1012_v55 = vld [vmem:[#allocation2] sm:$0x3] }
 0x277   :  { %1288 = vmatmul.mubr.f32.vlgmr.msra.gmra.mxu1 %v1012_v55 }
 0x278   :  { %1291 = vmatpush3.msra.mxu1 %v1114_v54  ;;  %1306 = vmatprep.mubr.msk.f32.mxu1 %vm1361_vm1, %v1360_v28 }
 0x279   :  { %1292 = vmatprep.subr.mxu1 %v1360_v28 }
 0x27a   :  { %1293 = vmatpush3.msra.mxu1 %v1113_v9 }
 0x27b   :  { %1294 = vmatprep.subr.mxu1 %v1360_v28 }
 0x27c   :  { %1295 = vmatpush3.msra.mxu1 %v1112_v13 }
 0x27d   :  { %1296 = vmatprep.subr.mxu1 %v1360_v28 }
 0x27e   :  { %1297 = vmatpush3.msra.mxu1 %v1111_v50 }
 0x27f   :  { %1298 = vmatprep.subr.mxu1 %v1360_v28 }
 0x280   :  { %1299 = vmatpush3.msra.mxu1 %v1110_v51 }
 0x281   :  { %1300 = vmatprep.subr.mxu1 %v1360_v28 }
 0x282   :  { %1301 = vmatpush3.msra.mxu1 %v1109_v56 }
 0x283   :  { %1302 = vmatprep.subr.mxu1 %v1360_v28 }
 0x284   :  { %1303 = vmatpush3.msra.mxu1 %v1108_v57 }
 0x285   :  { %1304 = vmatprep.subr.mxu1 %v1360_v28 }
 0x286   :  { %1305 = vmatpush3.msra.mxu1 %v1107_v58 }
 0x337   :  { %v1102_v14 = vpop.f32.mrf.mxu1 }
 0x338   :  { %v1103_v60 = vadd.f32 %v1226_v59, %v1102_v14 }
 0x339   :  { %v1289_v41 = vpop.f32.mrf.mxu1 }
 0x33a   :  { %v1106_v17 = vmax.f32 %v1103_v60, 0.0 }
 0x33c   :  { %1307 = vmatmul.mubr.msk.f32.vlgmr.msra.gmra.mxu1 %vm473_vm0, %v1106_v17 }
 0x3fc   :  { %v1191_v0 = vpop.f32.mrf.mxu1 }
 0x3fd   :  { %v1192_v37 = vadd.f32 %v1227_v61, %v1191_v0 }
 0x3fe   :  { %v1308_v28 = vpop.f32.mrf.mxu1 }
 0x3ff   :  { %1195 = vst [vmem:[#allocation3] sm:$0x3] %v1192_v37 }
 0x400   :  { %1346 = shalt.err (!%p1343_p4)
}
 0x401   :  { %1205 = dma.vmem_to_hbm [thread:$0]  %s1203_s3, 32, %s1959_s9, [#allocation4]  }
 0x402   :  { %1355 = dma.done.wait [#allocation4], 32  }
 0x403   :  { %1356 = vsyncadd [#allocation4], 4294967264 }
 0x404   :  { %1209 = vsyncpa [#allocation4], 1 }

</bundles_post_ra>
